<compile_context>
chip_gen: v7x
topology: tpu7x:2x2x1
jax: 0.10.0
libtpu: 0.0.40
codegen_flags: <defaults>
</compile_context>

<pallas_src>
import functools

import jax
import jax.numpy as jnp
from jax.experimental import pallas as pl
from jax.experimental.pallas import tpu as pltpu


def _pick_tile(n, max_tile):
    """Largest tile <= max_tile that satisfies the (8, 128) sublane rule."""
    if n <= max_tile:
        return n
    start = max_tile - (max_tile % 8)
    for cand in range(start, 7, -8):
        if n % cand == 0:
            return cand
    return n  # fallback: full extent (always legal)


# ---------------------------------------------------------------------------
# Kernel A: LayerNorm + fused QKV projection, head-split output layout.
# ---------------------------------------------------------------------------
def _ln_qkv_kernel(x_ref, gamma_ref, beta_ref, wqkv_ref,
                   q_ref, k_ref, v_ref, *, heads, dim_head, eps, compute_dtype):
    inner = heads * dim_head

    # LayerNorm in f32 on the VPU.
    x = x_ref[0].astype(jnp.float32)                              # (tn, D)
    mean = jnp.mean(x, axis=-1, keepdims=True)
    xc = x - mean
    var = jnp.mean(xc * xc, axis=-1, keepdims=True)
    xn = xc * jax.lax.rsqrt(var + eps)
    xn = xn * gamma_ref[...].astype(jnp.float32) + beta_ref[...].astype(jnp.float32)

    # One wide MXU matmul for the whole QKV projection (f32 accumulation).
    qkv = jnp.dot(xn.astype(compute_dtype), wqkv_ref[...],
                  preferred_element_type=jnp.float32)             # (tn, 3*inner)
    qkv = qkv.astype(compute_dtype)

    # Split into per-head blocks ONCE here (static slices), so the attention
    # kernel only ever sees contiguous (tile, dim_head) blocks.
    for h in range(heads):
        q_ref[0, h] = qkv[:, h * dim_head:(h + 1) * dim_head]
        k_ref[0, h] = qkv[:, inner + h * dim_head: inner + (h + 1) * dim_head]
        v_ref[0, h] = qkv[:, 2 * inner + h * dim_head: 2 * inner + (h + 1) * dim_head]


# ---------------------------------------------------------------------------
# Kernel B: flash-style attention + fused per-head output projection.
# ---------------------------------------------------------------------------
def _flash_attn_kernel(q_ref, k_ref, v_ref, wout_ref, bout_ref, o_ref,
                       m_sc, l_sc, acc_sc, out_sc, *, compute_dtype):
    h = pl.program_id(2)
    kv = pl.program_id(3)
    n_heads = pl.num_programs(2)
    n_kv = pl.num_programs(3)

    # Fresh projected-output accumulator for every (batch, q-tile).
    @pl.when(jnp.logical_and(h == 0, kv == 0))
    def _():
        out_sc[...] = jnp.zeros_like(out_sc[...])

    # Fresh online-softmax state for every head.
    @pl.when(kv == 0)
    def _():
        m_sc[...] = jnp.full_like(m_sc[...], -jnp.inf)
        l_sc[...] = jnp.zeros_like(l_sc[...])
        acc_sc[...] = jnp.zeros_like(acc_sc[...])

    q = q_ref[0, 0]                                               # (tq,  dh), pre-scaled
    k = k_ref[0, 0]                                               # (tkv, dh)
    v = v_ref[0, 0]                                               # (tkv, dh)

    # Scores: contract the last dims directly (no k.T relayout).
    s = jax.lax.dot_general(q, k, (((1,), (1,)), ((), ())),
                            preferred_element_type=jnp.float32)   # (tq, tkv) f32

    m_prev = m_sc[...]
    m_new = jnp.maximum(m_prev, jnp.max(s, axis=-1, keepdims=True))
    alpha = jnp.exp(m_prev - m_new)
    p = jnp.exp(s - m_new)                                        # (tq, tkv) f32
    l_sc[...] = alpha * l_sc[...] + jnp.sum(p, axis=-1, keepdims=True)
    acc_sc[...] = alpha * acc_sc[...] + jnp.dot(
        p.astype(compute_dtype), v, preferred_element_type=jnp.float32)
    m_sc[...] = m_new

    # End of the kv loop for this head: normalize and fold this head's slice
    # of the output projection into the shared (tq, D) accumulator.
    @pl.when(kv == n_kv - 1)
    def _():
        o_h = acc_sc[...] * pl.reciprocal(l_sc[...], approx=True)  # (tq, dh) f32
        out_sc[...] += jnp.dot(o_h.astype(compute_dtype), wout_ref[0],
                               preferred_element_type=jnp.float32)

    # Last head, last kv tile: add the bias and emit the lane-dense tile.
    @pl.when(jnp.logical_and(h == n_heads - 1, kv == n_kv - 1))
    def _():
        o_ref[0] = (out_sc[...] + bout_ref[...].astype(jnp.float32)).astype(o_ref.dtype)


# ---------------------------------------------------------------------------
# Wrapper
# ---------------------------------------------------------------------------
def attention_forward(x, params, *, heads, dim_head, eps=1e-5,
                      compute_dtype=jnp.bfloat16,
                      q_tile=256, kv_tile=512,
                      vmem_limit_bytes=48 * 1024 * 1024):
    """x: (B, N, D).  params in PyTorch nn.Linear / nn.LayerNorm conventions."""
    B, N, D = x.shape
    inner = heads * dim_head
    scale = dim_head ** (-0.5)

    tq = _pick_tile(N, q_tile)
    tkv = _pick_tile(N, kv_tile)

    gamma = params["ln_weight"].reshape(1, D).astype(jnp.float32)
    beta = params["ln_bias"].reshape(1, D).astype(jnp.float32)

    # nn.Linear weight is (out, in); kernels want (in, out).  Fold the softmax
    # scale into the Q columns so no per-score scaling happens in-kernel.
    wqkv = params["to_qkv_weight"].T.astype(jnp.float32)          # (D, 3*inner)
    wqkv = wqkv.at[:, :inner].multiply(scale).astype(compute_dtype)

    # (inner, D) -> (heads, dim_head, D): per-head slab of the output projection.
    wout = params["to_out_weight"].T.reshape(heads, dim_head, D).astype(compute_dtype)
    bout = params["to_out_bias"].reshape(1, D).astype(jnp.float32)

    # ------------------------------ kernel A -------------------------------
    qkv_shape = jax.ShapeDtypeStruct((B, heads, N, dim_head), compute_dtype)
    ln_qkv = functools.partial(_ln_qkv_kernel, heads=heads, dim_head=dim_head,
                               eps=eps, compute_dtype=compute_dtype)
    q, k, v = pl.pallas_call(
        ln_qkv,
        out_shape=(qkv_shape, qkv_shape, qkv_shape),
        grid_spec=pltpu.PrefetchScalarGridSpec(
            num_scalar_prefetch=0,
            grid=(B, N // tq),
            in_specs=[
                pl.BlockSpec((1, tq, D), lambda b, i: (b, i, 0)),        # x tile
                pl.BlockSpec((1, D), lambda b, i: (0, 0)),               # gamma
                pl.BlockSpec((1, D), lambda b, i: (0, 0)),               # beta
                pl.BlockSpec((D, 3 * inner), lambda b, i: (0, 0)),       # W_qkv^T (scaled)
            ],
            out_specs=(
                pl.BlockSpec((1, heads, tq, dim_head), lambda b, i: (b, 0, i, 0)),
                pl.BlockSpec((1, heads, tq, dim_head), lambda b, i: (b, 0, i, 0)),
                pl.BlockSpec((1, heads, tq, dim_head), lambda b, i: (b, 0, i, 0)),
            ),
        ),
        compiler_params=pltpu.CompilerParams(
            dimension_semantics=("parallel", "parallel"),
            vmem_limit_bytes=vmem_limit_bytes),
    )(x, gamma, beta, wqkv)

    # ------------------------------ kernel B -------------------------------
    flash = functools.partial(_flash_attn_kernel, compute_dtype=compute_dtype)
    out = pl.pallas_call(
        flash,
        out_shape=jax.ShapeDtypeStruct((B, N, D), x.dtype),
        grid_spec=pltpu.PrefetchScalarGridSpec(
            num_scalar_prefetch=0,
            grid=(B, N // tq, heads, N // tkv),
            in_specs=[
                pl.BlockSpec((1, 1, tq, dim_head),
                             lambda b, qi, h, kvi: (b, h, qi, 0)),       # q
                pl.BlockSpec((1, 1, tkv, dim_head),
                             lambda b, qi, h, kvi: (b, h, kvi, 0)),      # k
                pl.BlockSpec((1, 1, tkv, dim_head),
                             lambda b, qi, h, kvi: (b, h, kvi, 0)),      # v
                pl.BlockSpec((1, dim_head, D),
                             lambda b, qi, h, kvi: (h, 0, 0)),           # W_out[h]
                pl.BlockSpec((1, D), lambda b, qi, h, kvi: (0, 0)),      # b_out
            ],
            out_specs=pl.BlockSpec((1, tq, D), lambda b, qi, h, kvi: (b, qi, 0)),
            scratch_shapes=[
                pltpu.VMEM((tq, 1), jnp.float32),          # running max
                pltpu.VMEM((tq, 1), jnp.float32),          # running denominator
                pltpu.VMEM((tq, dim_head), jnp.float32),   # per-head o accumulator
                pltpu.VMEM((tq, D), jnp.float32),          # projected-output accumulator
            ],
        ),
        compiler_params=pltpu.CompilerParams(
            dimension_semantics=("parallel", "parallel", "arbitrary", "arbitrary"),
            vmem_limit_bytes=vmem_limit_bytes),
    )(q, k, v, wout, bout)
    return out


# ---------------------------------------------------------------------------
# Pure-JAX reference mirroring the PyTorch forward.
# ---------------------------------------------------------------------------
def attention_reference(x, params, *, heads, dim_head, eps=1e-5):
    B, N, D = x.shape
    inner = heads * dim_head
    scale = dim_head ** (-0.5)

    mean = jnp.mean(x, axis=-1, keepdims=True)
    var = jnp.mean((x - mean) ** 2, axis=-1, keepdims=True)
    xn = (x - mean) / jnp.sqrt(var + eps)
    xn = xn * params["ln_weight"] + params["ln_bias"]

    qkv = xn @ params["to_qkv_weight"].T
    q, k, v = jnp.split(qkv, 3, axis=-1)

    def split_heads(t):  # 'b n (h d) -> b h n d'
        return t.reshape(B, N, heads, dim_head).transpose(0, 2, 1, 3)

    q, k, v = map(split_heads, (q, k, v))
    dots = jnp.einsum("bhnd,bhmd->bhnm", q, k) * scale
    attn = jax.nn.softmax(dots, axis=-1)
    out = jnp.einsum("bhnm,bhmd->bhnd", attn, v)
    out = out.transpose(0, 2, 1, 3).reshape(B, N, inner)  # 'b h n d -> b n (h d)'
    return out @ params["to_out_weight"].T + params["to_out_bias"]


if __name__ == "__main__":
    # Small shapes consistent with the module (project_out=True branch).
    B, N, D = 2, 8, 32
    heads, dim_head = 4, 16
    inner = heads * dim_head

    key = jax.random.PRNGKey(0)
    kx, kqkv, kout, kbias, kg, kb = jax.random.split(key, 6)

    x = jax.random.normal(kx, (B, N, D), dtype=jnp.float32)
    params = {
        "ln_weight": 1.0 + 0.1 * jax.random.normal(kg, (D,), jnp.float32),
        "ln_bias": 0.05 * jax.random.normal(kb, (D,), jnp.float32),
        "to_qkv_weight": 0.05 * jax.random.normal(kqkv, (3 * inner, D), jnp.float32),
        "to_out_weight": 0.05 * jax.random.normal(kout, (D, inner), jnp.float32),
        "to_out_bias": 0.01 * jax.random.normal(kbias, (D,), jnp.float32),
    }

    ref = attention_reference(x, params, heads=heads, dim_head=dim_head)

    # Default path: bf16 MXU operands, f32 accumulation (v6e/v7x recipe).
    out_bf16 = jax.block_until_ready(
        attention_forward(x, params, heads=heads, dim_head=dim_head))
    assert out_bf16.shape == (B, N, D)
    assert jnp.allclose(out_bf16, ref, atol=3e-2, rtol=3e-2), "bf16 path mismatch"

    # Full-f32 operand path: tight structural check against the reference.
    out_f32 = jax.block_until_ready(
        attention_forward(x, params, heads=heads, dim_head=dim_head,
                          compute_dtype=jnp.float32))
    assert jnp.allclose(out_f32, ref, atol=5e-3, rtol=5e-3), "f32 path mismatch"

    print("KERNEL_OK")
</pallas_src>

<mosaic_0001>
module attributes {stable_mosaic.version = 11 : i64} {
  func.func @_ln_qkv_kernel(%arg0: i32, %arg1: i32, %arg2: memref<1x8x32xf32, #tpu.memory_space<vmem>>, %arg3: memref<1x32xf32, #tpu.memory_space<vmem>>, %arg4: memref<1x32xf32, #tpu.memory_space<vmem>>, %arg5: memref<32x192xbf16, #tpu.memory_space<vmem>>, %arg6: memref<1x4x8x16xbf16, #tpu.memory_space<vmem>>, %arg7: memref<1x4x8x16xbf16, #tpu.memory_space<vmem>>, %arg8: memref<1x4x8x16xbf16, #tpu.memory_space<vmem>>) attributes {dimension_semantics = [#tpu.dimension_semantics<parallel>, #tpu.dimension_semantics<parallel>], iteration_bounds = array<i64: 2, 1>, scalar_prefetch = 0 : i64, scratch_operands = 0 : i64, tpu.core_type = #tpu.core_type<tc>, window_params = [{transform_indices = @transform_0, window_bounds = array<i64: 1, 8, 32>}, {pipeline_mode = #tpu.pipeline_mode<synchronous>, transform_indices = @transform_1, window_bounds = array<i64: 1, 32>}, {pipeline_mode = #tpu.pipeline_mode<synchronous>, transform_indices = @transform_2, window_bounds = array<i64: 1, 32>}, {pipeline_mode = #tpu.pipeline_mode<synchronous>, transform_indices = @transform_3, window_bounds = array<i64: 32, 192>}, {transform_indices = @transform_4, window_bounds = array<i64: 1, 4, 8, 16>}, {transform_indices = @transform_5, window_bounds = array<i64: 1, 4, 8, 16>}, {transform_indices = @transform_6, window_bounds = array<i64: 1, 4, 8, 16>}]} {
    %c0 = arith.constant 0 : index
    %c0_0 = arith.constant 0 : index
    %c0_1 = arith.constant 0 : index
    %0 = vector.load %arg2[%c0, %c0_0, %c0_1] : memref<1x8x32xf32, #tpu.memory_space<vmem>>, vector<1x8x32xf32>
    %1 = vector.shape_cast %0 : vector<1x8x32xf32> to vector<8x32xf32>
    %cst = arith.constant dense<0.000000e+00> : vector<8xf32>
    %2 = vector.multi_reduction <add>, %1, %cst [1] : vector<8x32xf32> to vector<8xf32>
    %3 = vector.shape_cast %2 : vector<8xf32> to vector<8x1xf32>
    %cst_2 = arith.constant 3.200000e+01 : f32
    %4 = vector.broadcast %cst_2 : f32 to vector<8x1xf32>
    %5 = arith.divf %3, %4 : vector<8x1xf32>
    %6 = vector.broadcast %5 : vector<8x1xf32> to vector<8x32xf32>
    %7 = arith.subf %1, %6 : vector<8x32xf32>
    %8 = arith.mulf %7, %7 : vector<8x32xf32>
    %cst_3 = arith.constant dense<0.000000e+00> : vector<8xf32>
    %9 = vector.multi_reduction <add>, %8, %cst_3 [1] : vector<8x32xf32> to vector<8xf32>
    %10 = vector.shape_cast %9 : vector<8xf32> to vector<8x1xf32>
    %cst_4 = arith.constant 3.200000e+01 : f32
    %11 = vector.broadcast %cst_4 : f32 to vector<8x1xf32>
    %12 = arith.divf %10, %11 : vector<8x1xf32>
    %cst_5 = arith.constant 9.99999974E-6 : f32
    %13 = vector.broadcast %cst_5 : f32 to vector<8x1xf32>
    %14 = arith.addf %12, %13 : vector<8x1xf32>
    %15 = math.rsqrt %14 : vector<8x1xf32>
    %16 = vector.broadcast %15 : vector<8x1xf32> to vector<8x32xf32>
    %17 = arith.mulf %7, %16 : vector<8x32xf32>
    %c0_6 = arith.constant 0 : index
    %c0_7 = arith.constant 0 : index
    %18 = vector.load %arg3[%c0_6, %c0_7] : memref<1x32xf32, #tpu.memory_space<vmem>>, vector<1x32xf32>
    %19 = vector.broadcast %18 : vector<1x32xf32> to vector<8x32xf32>
    %20 = arith.mulf %17, %19 : vector<8x32xf32>
    %c0_8 = arith.constant 0 : index
    %c0_9 = arith.constant 0 : index
    %21 = vector.load %arg4[%c0_8, %c0_9] : memref<1x32xf32, #tpu.memory_space<vmem>>, vector<1x32xf32>
    %22 = vector.broadcast %21 : vector<1x32xf32> to vector<8x32xf32>
    %23 = arith.addf %20, %22 : vector<8x32xf32>
    %24 = arith.truncf %23 : vector<8x32xf32> to vector<8x32xbf16>
    %c0_10 = arith.constant 0 : index
    %c0_11 = arith.constant 0 : index
    %25 = vector.load %arg5[%c0_10, %c0_11] : memref<32x192xbf16, #tpu.memory_space<vmem>>, vector<32x192xbf16>
    %cst_12 = arith.constant dense<0.000000e+00> : vector<8x192xf32>
    %26 = tpu.matmul %24, %25, %cst_12 {dimension_numbers = #tpu.dot_dimension_numbers<[1], [0], [0], [1], [0, 0, 1, 1], [], []>} : vector<8x32xbf16>, vector<32x192xbf16>, vector<8x192xf32> -> vector<8x192xf32>
    %27 = arith.truncf %26 : vector<8x192xf32> to vector<8x192xbf16>
    %28 = vector.extract_strided_slice %27 {offsets = [0, 0], sizes = [8, 16], strides = [1, 1]} : vector<8x192xbf16> to vector<8x16xbf16>
    %c0_13 = arith.constant 0 : index
    %c0_14 = arith.constant 0 : index
    %c0_15 = arith.constant 0 : index
    %c0_16 = arith.constant 0 : index
    %29 = vector.load %arg6[%c0_13, %c0_14, %c0_15, %c0_16] : memref<1x4x8x16xbf16, #tpu.memory_space<vmem>>, vector<1x1x8x16xbf16>
    %30 = vector.shape_cast %29 : vector<1x1x8x16xbf16> to vector<8x16xbf16>
    %31 = vector.shape_cast %28 : vector<8x16xbf16> to vector<1x1x8x16xbf16>
    tpu.vector_store %arg6[%c0_13, %c0_14, %c0_15, %c0_16], %31 {strides = array<i32>} : memref<1x4x8x16xbf16, #tpu.memory_space<vmem>>, vector<1x1x8x16xbf16>,
    %32 = vector.extract_strided_slice %27 {offsets = [0, 64], sizes = [8, 16], strides = [1, 1]} : vector<8x192xbf16> to vector<8x16xbf16>
    %c0_17 = arith.constant 0 : index
    %c0_18 = arith.constant 0 : index
    %c0_19 = arith.constant 0 : index
    %c0_20 = arith.constant 0 : index
    %33 = vector.load %arg7[%c0_17, %c0_18, %c0_19, %c0_20] : memref<1x4x8x16xbf16, #tpu.memory_space<vmem>>, vector<1x1x8x16xbf16>
    %34 = vector.shape_cast %33 : vector<1x1x8x16xbf16> to vector<8x16xbf16>
    %35 = vector.shape_cast %32 : vector<8x16xbf16> to vector<1x1x8x16xbf16>
    tpu.vector_store %arg7[%c0_17, %c0_18, %c0_19, %c0_20], %35 {strides = array<i32>} : memref<1x4x8x16xbf16, #tpu.memory_space<vmem>>, vector<1x1x8x16xbf16>,
    %36 = vector.extract_strided_slice %27 {offsets = [0, 128], sizes = [8, 16], strides = [1, 1]} : vector<8x192xbf16> to vector<8x16xbf16>
    %c0_21 = arith.constant 0 : index
    %c0_22 = arith.constant 0 : index
    %c0_23 = arith.constant 0 : index
    %c0_24 = arith.constant 0 : index
    %37 = vector.load %arg8[%c0_21, %c0_22, %c0_23, %c0_24] : memref<1x4x8x16xbf16, #tpu.memory_space<vmem>>, vector<1x1x8x16xbf16>
    %38 = vector.shape_cast %37 : vector<1x1x8x16xbf16> to vector<8x16xbf16>
    %39 = vector.shape_cast %36 : vector<8x16xbf16> to vector<1x1x8x16xbf16>
    tpu.vector_store %arg8[%c0_21, %c0_22, %c0_23, %c0_24], %39 {strides = array<i32>} : memref<1x4x8x16xbf16, #tpu.memory_space<vmem>>, vector<1x1x8x16xbf16>,
    %40 = vector.extract_strided_slice %27 {offsets = [0, 16], sizes = [8, 16], strides = [1, 1]} : vector<8x192xbf16> to vector<8x16xbf16>
    %c0_25 = arith.constant 0 : index
    %c1 = arith.constant 1 : index
    %c0_26 = arith.constant 0 : index
    %c0_27 = arith.constant 0 : index
    %41 = vector.load %arg6[%c0_25, %c1, %c0_26, %c0_27] : memref<1x4x8x16xbf16, #tpu.memory_space<vmem>>, vector<1x1x8x16xbf16>
    %42 = vector.shape_cast %41 : vector<1x1x8x16xbf16> to vector<8x16xbf16>
    %43 = vector.shape_cast %40 : vector<8x16xbf16> to vector<1x1x8x16xbf16>
    tpu.vector_store %arg6[%c0_25, %c1, %c0_26, %c0_27], %43 {strides = array<i32>} : memref<1x4x8x16xbf16, #tpu.memory_space<vmem>>, vector<1x1x8x16xbf16>,
    %44 = vector.extract_strided_slice %27 {offsets = [0, 80], sizes = [8, 16], strides = [1, 1]} : vector<8x192xbf16> to vector<8x16xbf16>
    %c0_28 = arith.constant 0 : index
    %c1_29 = arith.constant 1 : index
    %c0_30 = arith.constant 0 : index
    %c0_31 = arith.constant 0 : index
    %45 = vector.load %arg7[%c0_28, %c1_29, %c0_30, %c0_31] : memref<1x4x8x16xbf16, #tpu.memory_space<vmem>>, vector<1x1x8x16xbf16>
    %46 = vector.shape_cast %45 : vector<1x1x8x16xbf16> to vector<8x16xbf16>
    %47 = vector.shape_cast %44 : vector<8x16xbf16> to vector<1x1x8x16xbf16>
    tpu.vector_store %arg7[%c0_28, %c1_29, %c0_30, %c0_31], %47 {strides = array<i32>} : memref<1x4x8x16xbf16, #tpu.memory_space<vmem>>, vector<1x1x8x16xbf16>,
    %48 = vector.extract_strided_slice %27 {offsets = [0, 144], sizes = [8, 16], strides = [1, 1]} : vector<8x192xbf16> to vector<8x16xbf16>
    %c0_32 = arith.constant 0 : index
    %c1_33 = arith.constant 1 : index
    %c0_34 = arith.constant 0 : index
    %c0_35 = arith.constant 0 : index
    %49 = vector.load %arg8[%c0_32, %c1_33, %c0_34, %c0_35] : memref<1x4x8x16xbf16, #tpu.memory_space<vmem>>, vector<1x1x8x16xbf16>
    %50 = vector.shape_cast %49 : vector<1x1x8x16xbf16> to vector<8x16xbf16>
    %51 = vector.shape_cast %48 : vector<8x16xbf16> to vector<1x1x8x16xbf16>
    tpu.vector_store %arg8[%c0_32, %c1_33, %c0_34, %c0_35], %51 {strides = array<i32>} : memref<1x4x8x16xbf16, #tpu.memory_space<vmem>>, vector<1x1x8x16xbf16>,
    %52 = vector.extract_strided_slice %27 {offsets = [0, 32], sizes = [8, 16], strides = [1, 1]} : vector<8x192xbf16> to vector<8x16xbf16>
    %c0_36 = arith.constant 0 : index
    %c2 = arith.constant 2 : index
    %c0_37 = arith.constant 0 : index
    %c0_38 = arith.constant 0 : index
    %53 = vector.load %arg6[%c0_36, %c2, %c0_37, %c0_38] : memref<1x4x8x16xbf16, #tpu.memory_space<vmem>>, vector<1x1x8x16xbf16>
    %54 = vector.shape_cast %53 : vector<1x1x8x16xbf16> to vector<8x16xbf16>
    %55 = vector.shape_cast %52 : vector<8x16xbf16> to vector<1x1x8x16xbf16>
    tpu.vector_store %arg6[%c0_36, %c2, %c0_37, %c0_38], %55 {strides = array<i32>} : memref<1x4x8x16xbf16, #tpu.memory_space<vmem>>, vector<1x1x8x16xbf16>,
    %56 = vector.extract_strided_slice %27 {offsets = [0, 96], sizes = [8, 16], strides = [1, 1]} : vector<8x192xbf16> to vector<8x16xbf16>
    %c0_39 = arith.constant 0 : index
    %c2_40 = arith.constant 2 : index
    %c0_41 = arith.constant 0 : index
    %c0_42 = arith.constant 0 : index
    %57 = vector.load %arg7[%c0_39, %c2_40, %c0_41, %c0_42] : memref<1x4x8x16xbf16, #tpu.memory_space<vmem>>, vector<1x1x8x16xbf16>
    %58 = vector.shape_cast %57 : vector<1x1x8x16xbf16> to vector<8x16xbf16>
    %59 = vector.shape_cast %56 : vector<8x16xbf16> to vector<1x1x8x16xbf16>
    tpu.vector_store %arg7[%c0_39, %c2_40, %c0_41, %c0_42], %59 {strides = array<i32>} : memref<1x4x8x16xbf16, #tpu.memory_space<vmem>>, vector<1x1x8x16xbf16>,
    %60 = vector.extract_strided_slice %27 {offsets = [0, 160], sizes = [8, 16], strides = [1, 1]} : vector<8x192xbf16> to vector<8x16xbf16>
    %c0_43 = arith.constant 0 : index
    %c2_44 = arith.constant 2 : index
    %c0_45 = arith.constant 0 : index
    %c0_46 = arith.constant 0 : index
    %61 = vector.load %arg8[%c0_43, %c2_44, %c0_45, %c0_46] : memref<1x4x8x16xbf16, #tpu.memory_space<vmem>>, vector<1x1x8x16xbf16>
    %62 = vector.shape_cast %61 : vector<1x1x8x16xbf16> to vector<8x16xbf16>
    %63 = vector.shape_cast %60 : vector<8x16xbf16> to vector<1x1x8x16xbf16>
    tpu.vector_store %arg8[%c0_43, %c2_44, %c0_45, %c0_46], %63 {strides = array<i32>} : memref<1x4x8x16xbf16, #tpu.memory_space<vmem>>, vector<1x1x8x16xbf16>,
    %64 = vector.extract_strided_slice %27 {offsets = [0, 48], sizes = [8, 16], strides = [1, 1]} : vector<8x192xbf16> to vector<8x16xbf16>
    %c0_47 = arith.constant 0 : index
    %c3 = arith.constant 3 : index
    %c0_48 = arith.constant 0 : index
    %c0_49 = arith.constant 0 : index
    %65 = vector.load %arg6[%c0_47, %c3, %c0_48, %c0_49] : memref<1x4x8x16xbf16, #tpu.memory_space<vmem>>, vector<1x1x8x16xbf16>
    %66 = vector.shape_cast %65 : vector<1x1x8x16xbf16> to vector<8x16xbf16>
    %67 = vector.shape_cast %64 : vector<8x16xbf16> to vector<1x1x8x16xbf16>
    tpu.vector_store %arg6[%c0_47, %c3, %c0_48, %c0_49], %67 {strides = array<i32>} : memref<1x4x8x16xbf16, #tpu.memory_space<vmem>>, vector<1x1x8x16xbf16>,
    %68 = vector.extract_strided_slice %27 {offsets = [0, 112], sizes = [8, 16], strides = [1, 1]} : vector<8x192xbf16> to vector<8x16xbf16>
    %c0_50 = arith.constant 0 : index
    %c3_51 = arith.constant 3 : index
    %c0_52 = arith.constant 0 : index
    %c0_53 = arith.constant 0 : index
    %69 = vector.load %arg7[%c0_50, %c3_51, %c0_52, %c0_53] : memref<1x4x8x16xbf16, #tpu.memory_space<vmem>>, vector<1x1x8x16xbf16>
    %70 = vector.shape_cast %69 : vector<1x1x8x16xbf16> to vector<8x16xbf16>
    %71 = vector.shape_cast %68 : vector<8x16xbf16> to vector<1x1x8x16xbf16>
    tpu.vector_store %arg7[%c0_50, %c3_51, %c0_52, %c0_53], %71 {strides = array<i32>} : memref<1x4x8x16xbf16, #tpu.memory_space<vmem>>, vector<1x1x8x16xbf16>,
    %72 = vector.extract_strided_slice %27 {offsets = [0, 176], sizes = [8, 16], strides = [1, 1]} : vector<8x192xbf16> to vector<8x16xbf16>
    %c0_54 = arith.constant 0 : index
    %c3_55 = arith.constant 3 : index
    %c0_56 = arith.constant 0 : index
    %c0_57 = arith.constant 0 : index
    %73 = vector.load %arg8[%c0_54, %c3_55, %c0_56, %c0_57] : memref<1x4x8x16xbf16, #tpu.memory_space<vmem>>, vector<1x1x8x16xbf16>
    %74 = vector.shape_cast %73 : vector<1x1x8x16xbf16> to vector<8x16xbf16>
    %75 = vector.shape_cast %72 : vector<8x16xbf16> to vector<1x1x8x16xbf16>
    tpu.vector_store %arg8[%c0_54, %c3_55, %c0_56, %c0_57], %75 {strides = array<i32>} : memref<1x4x8x16xbf16, #tpu.memory_space<vmem>>, vector<1x1x8x16xbf16>,
    return
  }
  func.func @transform_0(%arg0: i32, %arg1: i32) -> (i32, i32, i32) {
    %c0_i32 = arith.constant 0 : i32
    %c0_i32_0 = arith.constant 0 : i32
    return %arg0, %arg1, %c0_i32 : i32, i32, i32
  }
  func.func @transform_1(%arg0: i32, %arg1: i32) -> (i32, i32) {
    %c0_i32 = arith.constant 0 : i32
    %c0_i32_0 = arith.constant 0 : i32
    %c0_i32_1 = arith.constant 0 : i32
    return %c0_i32, %c0_i32_0 : i32, i32
  }
  func.func @transform_2(%arg0: i32, %arg1: i32) -> (i32, i32) {
    %c0_i32 = arith.constant 0 : i32
    %c0_i32_0 = arith.constant 0 : i32
    %c0_i32_1 = arith.constant 0 : i32
    return %c0_i32, %c0_i32_0 : i32, i32
  }
  func.func @transform_3(%arg0: i32, %arg1: i32) -> (i32, i32) {
    %c0_i32 = arith.constant 0 : i32
    %c0_i32_0 = arith.constant 0 : i32
    %c0_i32_1 = arith.constant 0 : i32
    return %c0_i32, %c0_i32_0 : i32, i32
  }
  func.func @transform_4(%arg0: i32, %arg1: i32) -> (i32, i32, i32, i32) {
    %c0_i32 = arith.constant 0 : i32
    %c0_i32_0 = arith.constant 0 : i32
    %c0_i32_1 = arith.constant 0 : i32
    return %arg0, %c0_i32, %arg1, %c0_i32_0 : i32, i32, i32, i32
  }
  func.func @transform_5(%arg0: i32, %arg1: i32) -> (i32, i32, i32, i32) {
    %c0_i32 = arith.constant 0 : i32
    %c0_i32_0 = arith.constant 0 : i32
    %c0_i32_1 = arith.constant 0 : i32
    return %arg0, %c0_i32, %arg1, %c0_i32_0 : i32, i32, i32, i32
  }
  func.func @transform_6(%arg0: i32, %arg1: i32) -> (i32, i32, i32, i32) {
    %c0_i32 = arith.constant 0 : i32
    %c0_i32_0 = arith.constant 0 : i32
    %c0_i32_1 = arith.constant 0 : i32
    return %arg0, %c0_i32, %arg1, %c0_i32_0 : i32, i32, i32, i32
  }
}

</mosaic_0001>

<bundles_post_ra>
// kernel: tpu_custom_call.1
= control target key start
LH: loop header
LB: loop body
LE: loop exit
PB: predicated region body
PF: predicated region fallthrough
CT: control target
= control target key end

     0   :  { %s1440_s0 = inlined_call_operand.hbm [shape: f32[2,8,32], index: 0, kind: input, shape index: {}]   ;;  %s1441_s1 = inlined_call_operand.vmem [shape: f32[1,32], index: 1, kind: input, shape index: {}]   ;;  %s1442_s2 = inlined_call_operand.vmem [shape: f32[1,32], index: 2, kind: input, shape index: {}]   ;;  %s1443_s3 = inlined_call_operand.hbm [shape: bf16[32,192], index: 3, kind: input, shape index: {}]   ;;  %s1444_s4 = inlined_call_operand.hbm [shape: bf16[2,4,8,16], index: 4, kind: output, shape index: {0}]   ;;  %s1445_s5 = inlined_call_operand.hbm [shape: bf16[2,4,8,16], index: 5, kind: output, shape index: {1}]   ;;  %s1446_s6 = inlined_call_operand.hbm [shape: bf16[2,4,8,16], index: 6, kind: output, shape index: {2}]  }
   0x1   :  { %1453 = sst [smem:[#allocation15_spill]] %s1440_s0 }
   0x2   :  { %1454 = sst [smem:[#allocation16_spill]] %s1443_s3 }
   0x3   :  { %12 = vsyncpa [#allocation3], 0 }
   0x4   :  { %14 = vsyncpa [#allocation3 + $0x1], 0 }
   0x5   :  { %15 = vsyncpa [#allocation6], 0 }
   0x6   :  { %16 = vsyncpa [#allocation4], 0 }
   0x7   :  { %18 = vsyncpa [#allocation4 + $0x1], 0 }
   0x8   :  { %19 = vsyncpa [#allocation9], 0 }
   0x9   :  { %21 = vsyncpa [#allocation9 + $0x1], 0  ;;  %s1107_s21 = smov 0   ;;  %s1109_s22 = smov 0  }
   0xa   :  { %s1111_s23 = smov 0   ;;  %s1113_s24 = smov 0  }
   0xb   :  { %s1115_s25 = smov 0   ;;  %s1117_s26 = smov 0  }
   0xc LB: > { %s1138_s27 = sadd.s32 4294967295, %s1054_s26   ;;  %s1450_s28 = sadd.s32 4294967294, %s1054_s26   ;;  %s1054_s26 = sphi %s1117_s26, %s27_s26   ;;  %s1050_s25 = sphi %s1115_s25, %s1477_s25   ;;  %s1046_s24 = sphi %s1113_s24, %s1476_s24   ;;  %s1042_s23 = sphi %s1111_s23, %s1475_s23   ;;  %s1038_s22 = sphi %s1109_s22, %s1474_s22   ;;  %s1034_s21 = sphi %s1107_s21, %s1473_s21  }
   0xd   : > { %p61_p0 = scmp.ne.s32.totalorder %s1038_s22, %s1034_s21  ;;  %p1447_p1 = scmp.eq.s32.totalorder %s1138_s27, 0 }
   0xe   : > { %p156_p3 = scmp.eq.s32.totalorder %s1450_s28, 1  ;;  %p703_p5 = scmp.ge.s32.totalorder %s1054_s26, 1 }
   0xf   : > { %p1149_p4 = por %p1447_p1, %p61_p0  ;;  %p219_p7 = scmp.lt.s32.totalorder %s1054_s26, 3 }
  0x10   : > { %p1154_p6 = por %p156_p3, %p61_p0  ;;  %s1056_s8 = smov [#allocation5]  }
  0x11   : > { %s1455_s29 = scalar_select %p1149_p4, 1, 0 }
  0x12   : > { %s1456_s30 = scalar_select %p1154_p6, 1, 0 }
  0x13   : > { %p1159_p8 = pnand %p703_p5, %p219_p7  ;;  %s237_s9 = sshll.u32 %s1056_s8, 4  ;;  %s238_s9 = int_to_ptr.vmem [resolvable:$true] %s237_s9 }
  0x14   : > { %s39_s11 = sadd.s32 1, %s1050_s25  ;;  %s1459_s3 = sld [smem:[#allocation16_spill]] }
  0x15   : > { %s1457_s7 = scalar_select %p1159_p8, 1, 0 }
  0x16   : > { %p760_p9 = pneg %p1159_p8 }
  0x18   : > { %p1168_p11 = pnand %p760_p9, %p1447_p1 }
  0x1a   : > { %s850_s14 = scalar_lea.hbm %s1459_s3, 512  ;;  %p852_p13 = pneg %p1168_p11 }
  0x1b   : > { %p851_p12 = scmp.ne.s32.totalorder %s1459_s3, %s850_s14  ;;  %p857_p5 = scmp.lt.u32.totalorder %s850_s14, %s1459_s3 }
  0x1d   : > { %p853_p0 = pnand %p852_p13, %p851_p12 }
  0x1f   : > { %p854_p3 = pneg %p853_p0 }
  0x21   : > { %p859_p7 = pnand %p857_p5, %p854_p3 }
  0x23   : > { %862 = shalt.err (!%p859_p7)
}
  0x24   : > { %s863_s19 = scalar_lea.vmem %s238_s9, 512  ;;  %p871_p2 = scmp.lt.s32.totalorder %s238_s9, %s238_s9 }
  0x25   : > { %p864_p9 = scmp.ne.s32.totalorder %s238_s9, %s863_s19  ;;  %p872_p6 = scmp.lt.s32.totalorder %s863_s19, %s863_s19 }
  0x27   : > { %p866_p10 = pnand %p864_p9, %p852_p13  ;;  %p873_p4 = por %p872_p6, %p871_p2 }
  0x29   : > { %p867_p1 = pneg %p866_p10 }
  0x2b   : > { %p874_p8 = pnand %p873_p4, %p867_p1 }
  0x2d   : > { %877 = shalt.err (!%p874_p8)
}
  0x2e   : > { %s1057_s20 = smov 128   ;;  %s1058_s8 = smov 8  }
  0x2f   : > { %763 = dma.hbm_to_vmem [thread:$0]  (!%p1168_p11), %s1459_s3, 512, %s238_s9, [#allocation6], %s1057_s20, %s1057_s20, %s1058_s8  }
  0x30   : > { %p41_p1 = scmp.ge.s32.totalorder %s39_s11, 2  ;;  %s48_s14 = sadd.s32 1, %s1042_s23 }
  0x31   : > { %p55_p2 = scmp.ne.s32.totalorder %s1042_s23, %s1038_s22  ;;  %p56_p4 = scmp.eq.s32.totalorder %s1054_s26, 0 }
  0x32   : > { %s1479_s11 = smov (%p41_p1, %s39_s11), 0  ;;  %p1461_p8 = scmp.eq.s32.totalorder %s1138_s27, 1 }
  0x33   : > { %p1195_p6 = por %p56_p4, %p55_p2  ;;  %s43_s10 = ssub.s32 %s1050_s25, %s1479_s11 }
  0x34   : > { %p1201_p10 = por %p1461_p8, %p55_p2  ;;  %p779_p12 = scmp.lt.s32.totalorder %s1054_s26, 2 }
  0x35   : > { %p46_p11 = scmp.eq.s32.totalorder %s43_s10, 0  ;;  %s251_s9 = sand.u32 1, %s1042_s23  }
  0x36   : > { %s706_s17 = sshll.u32 %s251_s9, 3  ;;  %s707_s19 = sshll.u32 %s1050_s25, 7 }
  0x37   : > { %s1210_s18 = scalar_select %p46_p11, %s1042_s23, %s48_s14  }
  0x38   : > { %s1463_s0 = sld [smem:[#allocation15_spill]]  ;;  %s255_s13 = scalar_lea.vmem [#allocation2], %s706_s17 }
  0x39   : > { %s263_s28 = sshll.u32 %s255_s13, 4  ;;  %p1222_p13 = pnand %p779_p12, %p1195_p6  ;;  %s1218_s28 = int_to_ptr.vmem [resolvable:$true] %s263_s28 }
  0x3a   : > { %s252_s14 = scalar_lea.sflag [#allocation3], %s251_s9 }
  0x3b   : > { %p880_p3 = pneg %p1222_p13 }
  0x3e   : > { %s1216_s12 = scalar_lea.hbm %s1463_s0, %s707_s19  ;;  %s883_s20 = scalar_lea.hbm %s1463_s0, 256 }
  0x3f   : > { %s878_s3 = scalar_lea.hbm %s1216_s12, 128  ;;  %p884_p9 = scmp.lt.u32.totalorder %s1216_s12, %s1463_s0 }
  0x40   : > { %p879_p0 = scmp.ne.s32.totalorder %s1216_s12, %s878_s3  ;;  %p885_p1 = scmp.lt.u32.totalorder %s883_s20, %s878_s3 }
  0x41   : > { %p887_p4 = scmp.lt.u32.totalorder %s878_s3, %s1216_s12 }
  0x42   : > { %p881_p5 = pnand %p880_p3, %p879_p0  ;;  %p886_p2 = por %p885_p1, %p884_p9 }
  0x44   : > { %p882_p7 = pneg %p881_p5  ;;  %p888_p6 = por %p887_p4, %p886_p2 }
  0x46   : > { %p889_p8 = pnand %p888_p6, %p882_p7 }
  0x48   : > { %892 = shalt.err (!%p889_p8)
}
  0x49   : > { %s893_s9 = scalar_lea.vmem %s1218_s28, 128  ;;  %s1059_s13 = smov [#allocation2]  }
  0x4a   : > { %p894_p12 = scmp.ne.s32.totalorder %s1218_s28, %s893_s9  ;;  %s898_s17 = sshll.u32 %s1059_s13, 4  ;;  %s899_s17 = int_to_ptr.vmem [resolvable:$false] %s898_s17 }
  0x4b   : > { %s900_s19 = scalar_lea.vmem %s899_s17, 256  ;;  %p901_p5 = scmp.lt.s32.totalorder %s1218_s28, %s899_s17 }
  0x4c   : > { %p896_p11 = pnand %p894_p12, %p880_p3  ;;  %p902_p9 = scmp.lt.s32.totalorder %s900_s19, %s893_s9 }
  0x4e   : > { %p897_p0 = pneg %p896_p11  ;;  %p903_p1 = por %p902_p9, %p901_p5 }
  0x50   : > { %p904_p2 = pnand %p903_p1, %p897_p0 }
  0x52   : > { %907 = shalt.err (!%p904_p2)
}
  0x53   : > { %767 = dma.hbm_to_vmem [thread:$0]  (!%p1222_p13), %s1216_s12, 128, %s1218_s28, %s252_s14  }
  0x54   : > { %p1465_p7 = scmp.ne.s32.totalorder %s1457_s7, 0 }
  0x55   : > { %s1254_s3 = sand.u32 (!%p1465_p7), 1, %s1038_s22   ;;  %p1466_p3 = scmp.ne.s32.totalorder (!%p1465_p7), %s1455_s29, 0 }
  0x56   : > { %272 = sbr.rel (%p1465_p7) target bundleno = 814 (0x32e), region = 36  ;;  %s709_s20 = sshll.u32 (!%p1465_p7), %s1254_s3, 3 }
  0x57   : > { %s275_s15 = scalar_lea.sflag (!%p1465_p7), [#allocation3], %s1254_s3  ;;  %s278_s8 = scalar_lea.vmem (!%p1465_p7), [#allocation2], %s709_s20 }
  0x5d   : > { %1017 = dma.done.wait (%p1466_p3), %s275_s15, 128  }
  0x5e   : > { %1019 = vsyncadd (%p1466_p3), %s275_s15, 4294967168  ;;  %p1467_p4 = scmp.eq.s32.totalorder %s1138_s27, 0 }
  0x60   : > { %1021 = dma.done.wait (%p1467_p4), [#allocation6], 512   ;;  %p1468_p13 = pmov %p1467_p4 }
  0x61   : > { %vm323_vm0 = vcmask 261120   ;;  %v322_v0 = vld [vmem:[%s278_s8] sm:$0xff]  ;;  %v842_v7 = vld [vmem:[#allocation5 + $0x4] ss:$8 sps:$4 sm:$0xff]   ;;  %v844_v8 = vld [vmem:[#allocation5] ss:$8 sps:$4 sm:$0xff]  }
  0x62   : > { %1023 = vsyncadd (%p1468_p13), [#allocation6], 4294966784  ;;  %v324_v1 = vsel %vm323_vm0, %v322_v0, 0.0  ;;  %v845_v9 = vld [vmem:[#allocation5 + $0x14] ss:$8 sps:$4 sm:$0xff]   ;;  %382 = vmatprep.subr.bf16.mxu0 %v842_v7  ;;  %v1060_v10 = vmov 0  }
  0x63   : > { %325 = vadd.xlane.f32.xlu0 %v324_v1  ;;  %414 = vmatprep.mubr.bf16.mxu0 %v1060_v10  ;;  %v847_v11 = vld [vmem:[#allocation5 + $0x10] ss:$8 sps:$4 sm:$0xff]   ;;  %s1276_s10 = sshll.u32 %s1254_s3, 4  ;;  %vm425_vm1 = vcmask 125952   ;;  %s1061_s14 = smov 32  }
  0x64   : > { %383 = vmatpush1.bf16.msra.mxu0 %v844_v8  ;;  %v714_v16 = vld [vmem:[%s1441_s1] ss:$0 sm:$0xff]  ;;  %s1451_s9 = smov 64   ;;  %s1280_s13 = scalar_lea.vmem [#allocation7], %s1276_s10 }
  0x65   : > { %384 = vmatprep.subr.bf16.mxu0 %v845_v9  ;;  %v715_v18 = vld [vmem:[%s1442_s2] ss:$0 sm:$0xff]  ;;  %s1285_s17 = scalar_lea.vmem [#allocation10], %s1276_s10  ;;  %s1063_s19 = smov 48  }
  0x66   : > { %s1064_s20 = smov 80   ;;  %s1065_s15 = smov 16  }
  0x67   : > { %s1066_s8 = smov 112   ;;  %s1067_s28 = smov 96  }
  0x68   : > { %385 = vmatpush1.bf16.msra.mxu0 %v847_v11  ;;  %s313_s29 = scalar_lea.vmem [#allocation8], %s1276_s10  ;;  %s488_s12 = sand.u32 1, %s1138_s27  }
  0x69   : > { %s525_s7 = sshll.u32 %s313_s29, 4  ;;  %s1299_s7 = int_to_ptr.vmem [resolvable:$true] %s525_s7 }
  0x6a   : > { %s908_s27 = scalar_lea.vmem %s1299_s7, 256 }
  0x6b   : > { %p909_p6 = scmp.ne.s32.totalorder %s1299_s7, %s908_s27 }
  0x6d   : > { %p910_p8 = pnand %p909_p6, %p1201_p10 }
  0x6f   : > { %p911_p12 = pneg %p910_p8 }
  0xf0   : > { %v326_v2 = vpop.xlane.xlu0 %325 }
  0xf1   : > { %v328_v3 = vmul.f32 0.03125, %v326_v2 }
  0xf3   : > { %v329_v4 = vsub.f32 %v322_v0, %v328_v3 }
  0xf5   : > { %v330_v5 = vmul.f32 %v329_v4, %v329_v4 }
  0xf7   : > { %v331_v6 = vsel %vm323_vm0, %v330_v5, 0.0 }
  0xf8   : > { %332 = vadd.xlane.f32.xlu0 %v331_v6 }
 0x185   : > { %v333_v12 = vpop.xlane.xlu0 %332 }
 0x186   : > { %v334_v13 = vmul.f32 0.03125, %v333_v12 }
 0x188   : > { %v335_v14 = vadd.f32 1e-05, %v334_v13 }
 0x18a   : > { %848 = vrsqrt.f32 %v335_v14 }
 0x194   : > { %v849_v15 = vpop.eup %848 }
 0x195   : > { %v337_v17 = vmul.f32 %v849_v15, %v329_v4 }
 0x197   : > { %v345_v19 = vmul.f32 %v714_v16, %v337_v17 }
 0x199   : > { %v353_v20 = vadd.f32 %v715_v18, %v345_v19 }
 0x19b   : > { %v354_v21 = vpack.c.bf16 %v353_v20, %v353_v20 }
 0x19d   : > { %720 = vmatmul.mubr.msk.bf16.vlgmr.msra.gmra.mrb[0].mxu0 %vm323_vm0, %v354_v21 }
 0x270   : > { %v416_v22 = vpop.f32.mrb[0].mxu0 }
 0x271   : > { %v423_v23 = vpack.c.bf16 %v416_v22, %v416_v22  ;;  %v418_v24 = vpop.f32.mrb[1].mxu0 }
 0x272   : > { %v424_v25 = vpack.c.bf16 %v418_v24, %v418_v24  ;;  %v420_v26 = vpop.f32.mrb[2].mxu0 }
 0x273   : > { %458 = vrot.lane.b32.xlu0 %v423_v23, %s1061_s14  ;;  %430 = vrot.lane.b32.xlu1 %v423_v23, %s1451_s9  ;;  %v421_v27 = vpop.f32.mrb[3].mxu0  ;;  %426 = vst.msk [vmem:[%s1280_s13] sm:$0xf] %vm425_vm1, %v423_v23  ;;  %s1294_s14 = sshll.u32 %s1046_s24, 8  ;;  %s1308_s24 = scalar_lea.sflag [#allocation9], %s488_s12 }
 0x274   : > { %434 = vst.msk [vmem:[%s1285_s17] sm:$0xf] %vm425_vm1, %v424_v25 }
 0x277   : > { %440 = vrot.lane.b32.xlu1 %v423_v23, %s1063_s19  ;;  %478 = vrot.lane.b32.xlu0 %v424_v25, %s1064_s20 }
 0x27b   : > { %473 = vrot.lane.b32.xlu1 %v423_v23, %s1065_s15  ;;  %s1068_s15 = smov [#allocation8]  }
 0x27f   : > { %435 = vrot.lane.b32.xlu1 %v423_v23, %s1066_s8 }
 0x283   : > { %453 = vrot.lane.b32.xlu1 %v423_v23, %s1067_s28 }
 0x287   : > { %448 = vrot.lane.b32.xlu1 %v424_v25, %s1066_s8  ;;  %s912_s8 = sshll.u32 %s1068_s15, 4  ;;  %s913_s8 = int_to_ptr.vmem [resolvable:$false] %s912_s8 }
 0x288   : > { %p915_p11 = scmp.lt.s32.totalorder %s1299_s7, %s913_s8 }
 0x28b   : > { %463 = vrot.lane.b32.xlu1 %v424_v25, %s1067_s28  ;;  %s914_s28 = scalar_lea.vmem %s913_s8, 512 }
 0x28c   : > { %p916_p0 = scmp.lt.s32.totalorder %s914_s28, %s908_s27 }
 0x28e   : > { %p917_p5 = por %p916_p0, %p915_p11 }
 0x28f   : > { %468 = vrot.lane.b32.xlu1 %v423_v23, %s1064_s20  ;;  %s1305_s20 = scalar_lea.hbm %s1445_s5, %s1294_s14 }
 0x290   : > { %p918_p9 = pnand %p917_p5, %p911_p12 }
 0x2e5   : > { %v459_v28 = vpop.permute.xlu0 %458  ;;  %v431_v29 = vpop.permute.xlu1 %430 }
 0x2e6   : > { %727 = vst.msk [vmem:[%s313_s29 + $0x8] sm:$0xf] %vm425_vm1, %v459_v28  ;;  %433 = vst.msk [vmem:[%s313_s29] sm:$0xf] %vm425_vm1, %v431_v29 }
 0x2e9   : > { %v441_v30 = vpop.permute.xlu1 %440  ;;  %v479_v31 = vpop.permute.xlu0 %478 }
 0x2ea   : > { %723 = vst.msk [vmem:[%s313_s29 + $0x4] sm:$0xf] %vm425_vm1, %v441_v30  ;;  %731 = vst.msk [vmem:[%s1285_s17 + $0xc] sm:$0xf] %vm425_vm1, %v479_v31 }
 0x2ed   : > { %v474_v32 = vpop.permute.xlu1 %473 }
 0x2ee   : > { %730 = vst.msk [vmem:[%s313_s29 + $0xc] sm:$0xf] %vm425_vm1, %v474_v32 }
 0x2ef   : > { %921 = shalt.err (!%p918_p9)
}
 0x2f0   : > { %s922_s29 = scalar_lea.hbm %s1305_s20, 256  ;;  %s926_s10 = scalar_lea.hbm %s1445_s5, 512 }
 0x2f1   : > { %p923_p1 = scmp.ne.s32.totalorder %s1305_s20, %s922_s29  ;;  %p927_p3 = scmp.lt.u32.totalorder %s1305_s20, %s1445_s5 }
 0x2f2   : > { %p928_p4 = scmp.lt.u32.totalorder %s926_s10, %s922_s29  ;;  %p930_p6 = scmp.lt.u32.totalorder %s922_s29, %s1305_s20 }
 0x2f3   : > { %p924_p2 = pnand %p923_p1, %p1201_p10 }
 0x2f4   : > { %p929_p13 = por %p928_p4, %p927_p3 }
 0x2f5   : > { %p925_p7 = pneg %p924_p2 }
 0x2f6   : > { %p931_p8 = por %p930_p6, %p929_p13 }
 0x2f8   : > { %p932_p12 = pnand %p931_p8, %p925_p7 }
 0x2fa   : > { %935 = shalt.err (!%p932_p12)
}
 0x2fb   : > { %s1069_s27 = smov 4   ;;  %v436_v33 = vpop.permute.xlu1 %435  ;;  %s542_s28 = sshll.u32 %s1285_s17, 4  ;;  %s1343_s28 = int_to_ptr.vmem [resolvable:$true] %s542_s28 }
 0x2fc   : > { %755 = dma.vmem_to_hbm [thread:$0]  (%p1201_p10), %s1299_s7, 256, %s1305_s20, %s1308_s24, %s1451_s9, %s1451_s9, %s1069_s27  }
 0x2fd   : > { %722 = vst.msk [vmem:[%s1280_s13 + $0x4] sm:$0xf] %vm425_vm1, %v436_v33  ;;  %s508_s29 = sshll.u32 %s1280_s13, 4  ;;  %s1349_s7 = scalar_lea.hbm %s1446_s6, %s1294_s14  ;;  %s1351_s29 = int_to_ptr.vmem [resolvable:$true] %s508_s29 }
 0x2fe   : > { %s936_s20 = scalar_lea.vmem %s1343_s28, 256  ;;  %s1070_s10 = smov [#allocation10]  }
 0x2ff   : > { %v454_v34 = vpop.permute.xlu1 %453  ;;  %p937_p11 = scmp.ne.s32.totalorder %s1343_s28, %s936_s20  ;;  %s940_s15 = sshll.u32 %s1070_s10, 4  ;;  %s941_s15 = int_to_ptr.vmem [resolvable:$false] %s940_s15 }
 0x300   : > { %726 = vst.msk [vmem:[%s1280_s13 + $0x8] sm:$0xf] %vm425_vm1, %v454_v34  ;;  %s942_s8 = scalar_lea.vmem %s941_s15, 512  ;;  %p943_p9 = scmp.lt.s32.totalorder %s1343_s28, %s941_s15 }
 0x301   : > { %p938_p0 = pnand %p937_p11, %p1201_p10  ;;  %p944_p1 = scmp.lt.s32.totalorder %s942_s8, %s936_s20 }
 0x303   : > { %v449_v35 = vpop.permute.xlu1 %448  ;;  %p939_p5 = pneg %p938_p0  ;;  %p945_p2 = por %p944_p1, %p943_p9 }
 0x304   : > { %725 = vst.msk [vmem:[%s1285_s17 + $0x4] sm:$0xf] %vm425_vm1, %v449_v35 }
 0x305   : > { %p946_p7 = pnand %p945_p2, %p939_p5 }
 0x307   : > { %v464_v36 = vpop.permute.xlu1 %463 }
 0x308   : > { %728 = vst.msk [vmem:[%s1285_s17 + $0x8] sm:$0xf] %vm425_vm1, %v464_v36 }
 0x309   : > { %949 = shalt.err (!%p946_p7)
}
 0x30a   : > { %s950_s17 = scalar_lea.hbm %s1349_s7, 256  ;;  %s954_s10 = scalar_lea.hbm %s1446_s6, 512 }
 0x30b   : > { %p951_p3 = scmp.ne.s32.totalorder %s1349_s7, %s950_s17  ;;  %p955_p6 = scmp.lt.u32.totalorder %s1349_s7, %s1446_s6 }
 0x30c   : > { %p956_p8 = scmp.lt.u32.totalorder %s954_s10, %s950_s17  ;;  %p958_p11 = scmp.lt.u32.totalorder %s950_s17, %s1349_s7 }
 0x30d   : > { %p952_p4 = pnand %p951_p3, %p1201_p10 }
 0x30e   : > { %p957_p12 = por %p956_p8, %p955_p6 }
 0x30f   : > { %p953_p13 = pneg %p952_p4 }
 0x310   : > { %p959_p0 = por %p958_p11, %p957_p12 }
 0x312   : > { %p960_p5 = pnand %p959_p0, %p953_p13 }
 0x314   : > { %963 = shalt.err (!%p960_p5)
}
 0x315   : > { %s1469_s20 = smov 64   ;;  %s1384_s17 = scalar_lea.hbm %s1444_s4, %s1294_s14  ;;  %v469_v37 = vpop.permute.xlu1 %468 }
 0x316   : > { %756 = dma.vmem_to_hbm [thread:$0]  (%p1201_p10), %s1343_s28, 256, %s1349_s7, %s1308_s24, %s1469_s20, %s1469_s20, %s1069_s27  }
 0x317   : > { %729 = vst.msk [vmem:[%s1280_s13 + $0xc] sm:$0xf] %vm425_vm1, %v469_v37  ;;  %s484_s12 = scalar_lea.sflag [#allocation4], %s1254_s3  ;;  %s964_s19 = scalar_lea.vmem %s1351_s29, 256 }
 0x318   : > { %p965_p9 = scmp.ne.s32.totalorder %s1351_s29, %s964_s19  ;;  %s1071_s10 = smov [#allocation7]  }
 0x319   : > { %s968_s15 = sshll.u32 %s1071_s10, 4  ;;  %s969_s15 = int_to_ptr.vmem [resolvable:$false] %s968_s15 }
 0x31a   : > { %p966_p1 = pnand %p965_p9, %p1201_p10  ;;  %s970_s0 = scalar_lea.vmem %s969_s15, 512 }
 0x31b   : > { %p971_p7 = scmp.lt.s32.totalorder %s1351_s29, %s969_s15  ;;  %p972_p3 = scmp.lt.s32.totalorder %s970_s0, %s964_s19 }
 0x31c   : > { %p967_p2 = pneg %p966_p1 }
 0x31d   : > { %p973_p4 = por %p972_p3, %p971_p7 }
 0x31f   : > { %p974_p13 = pnand %p973_p4, %p967_p2 }
 0x321   : > { %977 = shalt.err (!%p974_p13)
}
 0x322   : > { %s978_s13 = scalar_lea.hbm %s1384_s17, 256  ;;  %s982_s28 = scalar_lea.hbm %s1444_s4, 512 }
 0x323   : > { %p979_p6 = scmp.ne.s32.totalorder %s1384_s17, %s978_s13  ;;  %p983_p11 = scmp.lt.u32.totalorder %s1384_s17, %s1444_s4 }
 0x324   : > { %p984_p0 = scmp.lt.u32.totalorder %s982_s28, %s978_s13  ;;  %p986_p9 = scmp.lt.u32.totalorder %s978_s13, %s1384_s17 }
 0x325   : > { %p980_p8 = pnand %p979_p6, %p1201_p10 }
 0x326   : > { %p985_p5 = por %p984_p0, %p983_p11 }
 0x327   : > { %p981_p12 = pneg %p980_p8 }
 0x328   : > { %p987_p1 = por %p986_p9, %p985_p5 }
 0x32a   : > { %p988_p2 = pnand %p987_p1, %p981_p12 }
 0x32c   : > { %991 = shalt.err (!%p988_p2)
}
 0x32d   : > { %754 = dma.vmem_to_hbm [thread:$0]  (%p1201_p10), %s1351_s29, 256, %s1384_s17, %s484_s12, %s1469_s20, %s1469_s20, %s1069_s27  }
 0x32e PF: > { %s557_s0 = sand.u32 1, %s1034_s21   ;;  %p1470_p7 = scmp.ne.s32.totalorder %s1456_s30, 0 }
 0x32f   : > { %p1471_p3 = scmp.ge.s32.totalorder %s1054_s26, 2  ;;  %s558_s8 = scalar_lea.sflag [#allocation4], %s557_s0 }
 0x331   : > { %p769_p4 = pnand %p1471_p3, %p1470_p7 }
 0x333   : > { %1025 = dma.done.wait (!%p769_p4), %s558_s8, 256  }
 0x334   : > { %1027 = vsyncadd (!%p769_p4), %s558_s8, 4294967040  ;;  %s1472_s16 = sadd.s32 4294967294, %s1054_s26  }
 0x335   : > { %s566_s19 = sand.u32 1, %s1472_s16  }
 0x336   : > { %s567_s10 = scalar_lea.sflag [#allocation9], %s566_s19 }
 0x337   : > { %1029 = dma.done.wait (!%p769_p4), %s567_s10, 512  }
 0x338   : > { %1031 = vsyncadd (!%p769_p4), %s567_s10, 4294966784  ;;  %s27_s26 = sadd.s32 1, %s1054_s26   ;;  %s1473_s21 = smov %s1038_s22 }
 0x339   : > { %p24_p10 = scmp.ge.s32.totalorder %s27_s26, 4   ;;  %s1474_s22 = smov %s1042_s23 }
 0x33a   : > { %s1475_s23 = smov %s1210_s18  ;;  %s1476_s24 = smov %s1050_s25 }
 0x33b   : > { %s1477_s25 = smov %s1479_s11  ;;  %26 = sbr.rel (!%p24_p10) target bundleno = 12 (0xc), region = 126 }
 0x342   :  { %581 = vsyncpa [#allocation3], 1 }
 0x343   :  { %583 = vsyncpa [#allocation3 + $0x1], 1 }
 0x344   :  { %584 = vsyncpa [#allocation6], 1 }
 0x345   :  { %585 = vsyncpa [#allocation4], 1 }
 0x346   :  { %587 = vsyncpa [#allocation4 + $0x1], 1 }
 0x347   :  { %588 = vsyncpa [#allocation9], 1 }
 0x348   :  { %590 = vsyncpa [#allocation9 + $0x1], 1 }

</bundles_post_ra>
